<compile_context>
chip_gen: v7x
topology: tpu7x:2x2x1
jax: 0.10.0
libtpu: 0.0.40
codegen_flags: <defaults>
</compile_context>

<pallas_src>
import jax
import jax.numpy as jnp
from jax.experimental import pallas as pl
from jax.experimental.pallas import tpu as pltpu

OBS_LEN = 15
PRED_LEN = 45
INPUT_SIZE = OBS_LEN * 4 + PRED_LEN * 2      # 150
OUTPUT_SIZE = PRED_LEN * 2                   # 90
MID_SIZE = (INPUT_SIZE + OUTPUT_SIZE) // 2   # 120
LN_EPS = 1e-5

# Lane-padded (128-aligned) dims.
IN_P = 256    # 150 -> 256
MID_P = 128   # 120 -> 128
OUT_P = 128   #  90 -> 128
VEC_W = 256
VEC_ROWS = 16                                # 12 vectors, padded to multiple of 8

# Row offsets inside the 128-wide fused-weight slab (all multiples of 128).
R_WT1 = 0                 # trans1            (IN_P rows)
R_W2 = IN_P               # fc2 fused         (IN_P rows)
R_W3 = 2 * IN_P           # fc3 fused         (MID_P rows)
R_WT2 = R_W3 + MID_P      # trans2            (MID_P rows)
R_W4 = R_WT2 + MID_P      # fc4 fused         (OUT_P rows)
W128_ROWS = R_W4 + OUT_P  # 896

# Row indices inside the bias / gamma / beta slab.
(B1_R, G2_R, BE2_R, BT1_R, B2_R,
 G3_R, BE3_R, BT2_R, B3_R, G4_R, BE4_R, B4_R) = range(12)


def _round_up(a, m):
    return (a + m - 1) // m * m


def _choose_tiling(B):
    """Batch tile / padded batch.  Small B: one tile.  Large B: TB in
    {512, 1024} (multiple of 256 for v6e/v7x MXU) with Bp rounded so the grid
    is even and >= 2, so the 'parallel' axis shards across v7x's 2 TCs."""
    if B <= 512:
        TB = _round_up(max(B, 8), 8)
        return TB, TB
    TB = 512 if B <= 2048 else 1024          # cap at 1024 (v7x VMEM headroom)
    return TB, _round_up(B, 2 * TB)


# ----------------------------------------------------------------------------
# Kernel
# ----------------------------------------------------------------------------
def fc_wh_kernel(x_ref, w256_ref, w128_ref, vec_ref, out_ref):
    # Activations arrive in bf16 (halves the HBM read); compute in f32.
    x = x_ref[...].astype(jnp.float32)       # (TB, 256); lanes >= 150 are zero

    def bias(row, width):
        # (1, width) f32 view into the resident bias/LN-param slab.
        return vec_ref[pl.ds(row, 1), pl.ds(0, width)]

    def lin(h, w_ref, r0, rows, b_row, width):
        # bf16 MXU matmul with f32 accumulation; weight slice loaded at its
        # point of use (tile-aligned view into the resident slab).
        w = w_ref[pl.ds(r0, rows), :]
        return jnp.dot(h.astype(jnp.bfloat16), w,
                       preferred_element_type=jnp.float32) + bias(b_row, width)

    def ln_gelu(h, d_true, g_row, be_row):
        # Single-pass LayerNorm statistics over the TRUE feature count.
        # Padded lanes of h are zero and gamma/beta padding is zero, so padded
        # lanes stay zero through LN and GELU (no lane mask needed).
        d_pad = h.shape[-1]
        inv_d = 1.0 / d_true
        mu = jnp.sum(h, axis=-1, keepdims=True) * inv_d
        ex2 = jnp.sum(h * h, axis=-1, keepdims=True) * inv_d
        var = ex2 - mu * mu
        ln = ((h - mu) * jax.lax.rsqrt(var + LN_EPS) * bias(g_row, d_pad)
              + bias(be_row, d_pad))
        # exact (erf-based) GELU, matching torch.nn.GELU() default
        return 0.5 * ln * (1.0 + jax.lax.erf(ln * (1.0 / jnp.sqrt(2.0))))

    # fc1: three Linears fused offline into one (IN, IN) matmul; + residual
    x = lin(x, w256_ref, 0, IN_P, B1_R, IN_P) + x

    # fc2: LN, GELU, two Linears fused into one (IN, MID); + trans1(x)
    h = ln_gelu(x, INPUT_SIZE, G2_R, BE2_R)
    x = (lin(h, w128_ref, R_W2, IN_P, B2_R, MID_P)
         + lin(x, w128_ref, R_WT1, IN_P, BT1_R, MID_P))

    # fc3: LN, GELU, two Linears fused into one (MID, OUT); + trans2(x)
    h = ln_gelu(x, MID_SIZE, G3_R, BE3_R)
    x = (lin(h, w128_ref, R_W3, MID_P, B3_R, OUT_P)
         + lin(x, w128_ref, R_WT2, MID_P, BT2_R, OUT_P))

    # fc4: LN, GELU, three Linears fused (Dropout p=0 == identity); + residual
    h = ln_gelu(x, OUTPUT_SIZE, G4_R, BE4_R)
    x = lin(h, w128_ref, R_W4, OUT_P, B4_R, OUT_P) + x

    out_ref[...] = x.astype(out_ref.dtype)


# ----------------------------------------------------------------------------
# Wrapper
# ----------------------------------------------------------------------------
@jax.jit
def fc_wh_pallas(x, packed):
    w256, w128, vec = packed
    B = x.shape[0]
    TB, Bp = _choose_tiling(B)
    grid = (Bp // TB,)

    # Pad activations to a lane-dense (Bp, 256) bf16 slab; padded rows/lanes = 0.
    x_p = jnp.zeros((Bp, IN_P), jnp.bfloat16).at[:B, :INPUT_SIZE].set(
        x.astype(jnp.bfloat16))

    macs_per_row = (IN_P * IN_P + 2 * IN_P * MID_P
                    + 2 * MID_P * OUT_P + OUT_P * OUT_P)
    flops = 2 * Bp * macs_per_row
    transcendentals = Bp * (IN_P + MID_P + OUT_P + 3)
    bytes_accessed = ((IN_P * IN_P + W128_ROWS * MID_P) * 2      # bf16 weights
                      + VEC_ROWS * VEC_W * 4                     # f32 biases/LN
                      + Bp * IN_P * 2 + Bp * OUT_P * 4)          # acts in/out

    out = pl.pallas_call(
        fc_wh_kernel,
        out_shape=jax.ShapeDtypeStruct((Bp, OUT_P), jnp.float32),
        grid=grid,
        in_specs=[
            pl.BlockSpec((TB, IN_P), lambda i: (i, 0)),          # activations
            # Parameter inputs use a constant index_map -> fetched once and
            # kept resident in VMEM across all grid steps.
            pl.BlockSpec((IN_P, IN_P), lambda i: (0, 0)),        # fused fc1 W
            pl.BlockSpec((W128_ROWS, MID_P), lambda i: (0, 0)),  # other fused W
            pl.BlockSpec((VEC_ROWS, VEC_W), lambda i: (0, 0)),   # biases/LN
        ],
        out_specs=pl.BlockSpec((TB, OUT_P), lambda i: (i, 0)),
        compiler_params=pltpu.CompilerParams(
            dimension_semantics=("parallel",),
            vmem_limit_bytes=32 * 1024 * 1024,   # <= default scoped on all gens
        ),
        cost_estimate=pl.CostEstimate(
            flops=flops,
            transcendentals=transcendentals,
            bytes_accessed=bytes_accessed),
    )(x_p, w256, w128, vec)

    return out[:B, :OUTPUT_SIZE]


def pack_params(params):
    """Fuse back-to-back Linears offline (f32) and pack into 3 resident slabs.

    Weights are stored (in, out) == W.T.  Fused products/biases are composed
    in f32, zero-padded to 128-aligned dims, and cast to bf16 once.  Biases /
    LN gamma / LN beta stay f32 in one (16, 256) slab.
    """
    (w1a, b1a, w1b, b1b, w1c, b1c,
     g2, be2, w2a, b2a, w2b, b2b,
     wt1, bt1,
     g3, be3, w3a, b3a, w3b, b3b,
     wt2, bt2,
     g4, be4, w4a, b4a, w4b, b4b, w4c, b4c) = params

    # Offline fusion: y = ((x@Wa+ba)@Wb+bb)@Wc+bc == x@(Wa@Wb@Wc) + fused bias.
    W1 = w1a @ w1b @ w1c
    B1 = b1a @ w1b @ w1c + b1b @ w1c + b1c
    W2 = w2a @ w2b
    B2 = b2a @ w2b + b2b
    W3 = w3a @ w3b
    B3 = b3a @ w3b + b3b
    W4 = w4a @ w4b @ w4c                      # Dropout(p=0) == identity
    B4 = b4a @ w4b @ w4c + b4b @ w4c + b4c

    def padw(w, rin, cout):
        out = jnp.zeros((rin, cout), jnp.float32)
        return out.at[:w.shape[0], :w.shape[1]].set(w)

    def padv(v):
        v = jnp.asarray(v, jnp.float32).reshape(-1)
        out = jnp.zeros((VEC_W,), jnp.float32)
        return out.at[:v.shape[0]].set(v)

    w256 = padw(W1, IN_P, IN_P).astype(jnp.bfloat16)               # (256, 256)

    w128 = jnp.concatenate([
        padw(wt1, IN_P, MID_P),     # R_WT1
        padw(W2, IN_P, MID_P),      # R_W2
        padw(W3, MID_P, OUT_P),     # R_W3
        padw(wt2, MID_P, OUT_P),    # R_WT2
        padw(W4, OUT_P, OUT_P),     # R_W4
    ], axis=0).astype(jnp.bfloat16)                                # (896, 128)

    rows = [B1, g2, be2, bt1, B2, g3, be3, bt2, B3, g4, be4, B4]
    vec = jnp.stack([padv(v) for v in rows], axis=0)
    vec = jnp.concatenate(
        [vec, jnp.zeros((VEC_ROWS - vec.shape[0], VEC_W), jnp.float32)], axis=0)

    return w256, w128, vec


# ----------------------------------------------------------------------------
# Pure-JAX f32 reference (unfused; same math as the PyTorch module)
# ----------------------------------------------------------------------------
def _layernorm(h, gamma, beta):
    mu = jnp.mean(h, axis=-1, keepdims=True)
    var = jnp.mean((h - mu) ** 2, axis=-1, keepdims=True)
    return (h - mu) * jax.lax.rsqrt(var + LN_EPS) * gamma + beta


def _gelu(h):
    return 0.5 * h * (1.0 + jax.lax.erf(h * (1.0 / jnp.sqrt(2.0))))


def fc_wh_reference(x, params):
    (w1a, b1a, w1b, b1b, w1c, b1c,
     g2, be2, w2a, b2a, w2b, b2b,
     wt1, bt1,
     g3, be3, w3a, b3a, w3b, b3b,
     wt2, bt2,
     g4, be4, w4a, b4a, w4b, b4b, w4c, b4c) = params

    def lin(h, w, b):
        return h @ w + b

    h = lin(lin(lin(x, w1a, b1a), w1b, b1b), w1c, b1c)
    x = h + x
    h = _gelu(_layernorm(x, g2, be2))
    x = lin(lin(h, w2a, b2a), w2b, b2b) + lin(x, wt1, bt1)
    h = _gelu(_layernorm(x, g3, be3))
    x = lin(lin(h, w3a, b3a), w3b, b3b) + lin(x, wt2, bt2)
    h = _gelu(_layernorm(x, g4, be4))
    x = lin(lin(lin(h, w4a, b4a), w4b, b4b), w4c, b4c) + x
    return x


def init_params(key):
    """Deterministic synthetic init mirroring _init_weights:
    Linear weights ~ trunc_normal(std=0.02), biases = 0,
    LayerNorm gamma = 1, beta = 0 (PyTorch defaults).
    Weights stored as (in, out) == W.T.  Biases/gammas stored as (1, dim)."""
    def linear(key, fan_in, fan_out):
        w = 0.02 * jax.random.truncated_normal(
            key, -2.0, 2.0, (fan_in, fan_out), jnp.float32)
        b = jnp.zeros((1, fan_out), jnp.float32)
        return w, b

    def lnorm(dim):
        return jnp.ones((1, dim), jnp.float32), jnp.zeros((1, dim), jnp.float32)

    keys = jax.random.split(key, 16)
    ki = iter(keys)

    w1a, b1a = linear(next(ki), INPUT_SIZE, INPUT_SIZE)
    w1b, b1b = linear(next(ki), INPUT_SIZE, INPUT_SIZE)
    w1c, b1c = linear(next(ki), INPUT_SIZE, INPUT_SIZE)

    g2, be2 = lnorm(INPUT_SIZE)
    w2a, b2a = linear(next(ki), INPUT_SIZE, MID_SIZE)
    w2b, b2b = linear(next(ki), MID_SIZE, MID_SIZE)
    wt1, bt1 = linear(next(ki), INPUT_SIZE, MID_SIZE)

    g3, be3 = lnorm(MID_SIZE)
    w3a, b3a = linear(next(ki), MID_SIZE, OUTPUT_SIZE)
    w3b, b3b = linear(next(ki), OUTPUT_SIZE, OUTPUT_SIZE)
    wt2, bt2 = linear(next(ki), MID_SIZE, OUTPUT_SIZE)

    g4, be4 = lnorm(OUTPUT_SIZE)
    w4a, b4a = linear(next(ki), OUTPUT_SIZE, OUTPUT_SIZE)
    w4b, b4b = linear(next(ki), OUTPUT_SIZE, OUTPUT_SIZE)
    w4c, b4c = linear(next(ki), OUTPUT_SIZE, OUTPUT_SIZE)

    return (w1a, b1a, w1b, b1b, w1c, b1c,
            g2, be2, w2a, b2a, w2b, b2b,
            wt1, bt1,
            g3, be3, w3a, b3a, w3b, b3b,
            wt2, bt2,
            g4, be4, w4a, b4a, w4b, b4b, w4c, b4c)


if __name__ == "__main__":
    key = jax.random.PRNGKey(0)
    k_x, k_p = jax.random.split(key)

    batch = 8
    x = jax.random.normal(k_x, (batch, INPUT_SIZE), jnp.float32)
    params = init_params(k_p)
    packed = pack_params(params)

    out = fc_wh_pallas(x, packed)
    out = jax.block_until_ready(out)

    ref = fc_wh_reference(x, params)
    assert out.shape == (batch, OUTPUT_SIZE)
    # bf16 weights/activations and offline-fused weights -> relaxed tolerance
    # vs the f32 reference.
    assert jnp.allclose(out, ref, atol=2e-2, rtol=2e-2), "mismatch vs JAX reference"

    print("KERNEL_OK")
</pallas_src>

<mosaic_0001>
module attributes {stable_mosaic.version = 11 : i64} {
  func.func @fc_wh_kernel(%arg0: i32, %arg1: memref<8x256xbf16, #tpu.memory_space<vmem>>, %arg2: memref<256x256xbf16, #tpu.memory_space<vmem>>, %arg3: memref<896x128xbf16, #tpu.memory_space<vmem>>, %arg4: memref<16x256xf32, #tpu.memory_space<vmem>>, %arg5: memref<8x128xf32, #tpu.memory_space<vmem>>) attributes {dimension_semantics = [#tpu.dimension_semantics<parallel>], iteration_bounds = array<i64: 1>, scalar_prefetch = 0 : i64, scratch_operands = 0 : i64, tpu.core_type = #tpu.core_type<tc>, window_params = [{transform_indices = @transform_0, window_bounds = array<i64: 8, 256>}, {pipeline_mode = #tpu.pipeline_mode<synchronous>, transform_indices = @transform_1, window_bounds = array<i64: 256, 256>}, {pipeline_mode = #tpu.pipeline_mode<synchronous>, transform_indices = @transform_2, window_bounds = array<i64: 896, 128>}, {pipeline_mode = #tpu.pipeline_mode<synchronous>, transform_indices = @transform_3, window_bounds = array<i64: 16, 256>}, {transform_indices = @transform_4, window_bounds = array<i64: 8, 128>}]} {
    %c0 = arith.constant 0 : index
    %c0_0 = arith.constant 0 : index
    %0 = vector.load %arg1[%c0, %c0_0] : memref<8x256xbf16, #tpu.memory_space<vmem>>, vector<8x256xbf16>
    %1 = arith.extf %0 : vector<8x256xbf16> to vector<8x256xf32>
    %c0_1 = arith.constant 0 : index
    %c0_2 = arith.constant 0 : index
    %2 = vector.load %arg2[%c0_1, %c0_2] : memref<256x256xbf16, #tpu.memory_space<vmem>>, vector<256x256xbf16>
    %3 = arith.truncf %1 : vector<8x256xf32> to vector<8x256xbf16>
    %cst = arith.constant dense<0.000000e+00> : vector<8x256xf32>
    %4 = tpu.matmul %3, %2, %cst {dimension_numbers = #tpu.dot_dimension_numbers<[1], [0], [0], [1], [0, 0, 1, 1], [], []>} : vector<8x256xbf16>, vector<256x256xbf16>, vector<8x256xf32> -> vector<8x256xf32>
    %c0_3 = arith.constant 0 : index
    %c0_4 = arith.constant 0 : index
    %5 = vector.load %arg4[%c0_3, %c0_4] : memref<16x256xf32, #tpu.memory_space<vmem>>, vector<1x256xf32>
    %6 = vector.broadcast %5 : vector<1x256xf32> to vector<8x256xf32>
    %7 = arith.addf %4, %6 : vector<8x256xf32>
    %8 = arith.addf %7, %1 : vector<8x256xf32>
    %cst_5 = arith.constant dense<0.000000e+00> : vector<8xf32>
    %9 = vector.multi_reduction <add>, %8, %cst_5 [1] : vector<8x256xf32> to vector<8xf32>
    %10 = vector.shape_cast %9 : vector<8xf32> to vector<8x1xf32>
    %cst_6 = arith.constant 0.00666666683 : f32
    %11 = vector.broadcast %cst_6 : f32 to vector<8x1xf32>
    %12 = arith.mulf %10, %11 : vector<8x1xf32>
    %13 = arith.mulf %8, %8 : vector<8x256xf32>
    %cst_7 = arith.constant dense<0.000000e+00> : vector<8xf32>
    %14 = vector.multi_reduction <add>, %13, %cst_7 [1] : vector<8x256xf32> to vector<8xf32>
    %15 = vector.shape_cast %14 : vector<8xf32> to vector<8x1xf32>
    %cst_8 = arith.constant 0.00666666683 : f32
    %16 = vector.broadcast %cst_8 : f32 to vector<8x1xf32>
    %17 = arith.mulf %15, %16 : vector<8x1xf32>
    %18 = arith.mulf %12, %12 : vector<8x1xf32>
    %19 = arith.subf %17, %18 : vector<8x1xf32>
    %20 = vector.broadcast %12 : vector<8x1xf32> to vector<8x256xf32>
    %21 = arith.subf %8, %20 : vector<8x256xf32>
    %cst_9 = arith.constant 9.99999974E-6 : f32
    %22 = vector.broadcast %cst_9 : f32 to vector<8x1xf32>
    %23 = arith.addf %19, %22 : vector<8x1xf32>
    %24 = math.rsqrt %23 : vector<8x1xf32>
    %25 = vector.broadcast %24 : vector<8x1xf32> to vector<8x256xf32>
    %26 = arith.mulf %21, %25 : vector<8x256xf32>
    %c1 = arith.constant 1 : index
    %c0_10 = arith.constant 0 : index
    %27 = vector.load %arg4[%c1, %c0_10] : memref<16x256xf32, #tpu.memory_space<vmem>>, vector<1x256xf32>
    %28 = vector.broadcast %27 : vector<1x256xf32> to vector<8x256xf32>
    %29 = arith.mulf %26, %28 : vector<8x256xf32>
    %c2 = arith.constant 2 : index
    %c0_11 = arith.constant 0 : index
    %30 = vector.load %arg4[%c2, %c0_11] : memref<16x256xf32, #tpu.memory_space<vmem>>, vector<1x256xf32>
    %31 = vector.broadcast %30 : vector<1x256xf32> to vector<8x256xf32>
    %32 = arith.addf %29, %31 : vector<8x256xf32>
    %cst_12 = arith.constant 5.000000e-01 : f32
    %33 = vector.broadcast %cst_12 : f32 to vector<8x256xf32>
    %34 = arith.mulf %33, %32 : vector<8x256xf32>
    %cst_13 = arith.constant 2.000000e+00 : f32
    %35 = math.sqrt %cst_13 : f32
    %cst_14 = arith.constant 1.000000e+00 : f32
    %36 = arith.divf %cst_14, %35 : f32
    %37 = vector.broadcast %36 : f32 to vector<8x256xf32>
    %38 = arith.mulf %32, %37 : vector<8x256xf32>
    %39 = math.erf %38 : vector<8x256xf32>
    %cst_15 = arith.constant 1.000000e+00 : f32
    %40 = vector.broadcast %cst_15 : f32 to vector<8x256xf32>
    %41 = arith.addf %40, %39 : vector<8x256xf32>
    %42 = arith.mulf %34, %41 : vector<8x256xf32>
    %c256 = arith.constant 256 : index
    %c0_16 = arith.constant 0 : index
    %43 = vector.load %arg3[%c256, %c0_16] : memref<896x128xbf16, #tpu.memory_space<vmem>>, vector<256x128xbf16>
    %44 = arith.truncf %42 : vector<8x256xf32> to vector<8x256xbf16>
    %cst_17 = arith.constant dense<0.000000e+00> : vector<8x128xf32>
    %45 = tpu.matmul %44, %43, %cst_17 {dimension_numbers = #tpu.dot_dimension_numbers<[1], [0], [0], [1], [0, 0, 1, 1], [], []>} : vector<8x256xbf16>, vector<256x128xbf16>, vector<8x128xf32> -> vector<8x128xf32>
    %c4 = arith.constant 4 : index
    %c0_18 = arith.constant 0 : index
    %46 = vector.load %arg4[%c4, %c0_18] : memref<16x256xf32, #tpu.memory_space<vmem>>, vector<1x128xf32>
    %47 = vector.broadcast %46 : vector<1x128xf32> to vector<8x128xf32>
    %48 = arith.addf %45, %47 : vector<8x128xf32>
    %c0_19 = arith.constant 0 : index
    %c0_20 = arith.constant 0 : index
    %49 = vector.load %arg3[%c0_19, %c0_20] : memref<896x128xbf16, #tpu.memory_space<vmem>>, vector<256x128xbf16>
    %50 = arith.truncf %8 : vector<8x256xf32> to vector<8x256xbf16>
    %cst_21 = arith.constant dense<0.000000e+00> : vector<8x128xf32>
    %51 = tpu.matmul %50, %49, %cst_21 {dimension_numbers = #tpu.dot_dimension_numbers<[1], [0], [0], [1], [0, 0, 1, 1], [], []>} : vector<8x256xbf16>, vector<256x128xbf16>, vector<8x128xf32> -> vector<8x128xf32>
    %c3 = arith.constant 3 : index
    %c0_22 = arith.constant 0 : index
    %52 = vector.load %arg4[%c3, %c0_22] : memref<16x256xf32, #tpu.memory_space<vmem>>, vector<1x128xf32>
    %53 = vector.broadcast %52 : vector<1x128xf32> to vector<8x128xf32>
    %54 = arith.addf %51, %53 : vector<8x128xf32>
    %55 = arith.addf %48, %54 : vector<8x128xf32>
    %cst_23 = arith.constant dense<0.000000e+00> : vector<8xf32>
    %56 = vector.multi_reduction <add>, %55, %cst_23 [1] : vector<8x128xf32> to vector<8xf32>
    %57 = vector.shape_cast %56 : vector<8xf32> to vector<8x1xf32>
    %cst_24 = arith.constant 0.00833333377 : f32
    %58 = vector.broadcast %cst_24 : f32 to vector<8x1xf32>
    %59 = arith.mulf %57, %58 : vector<8x1xf32>
    %60 = arith.mulf %55, %55 : vector<8x128xf32>
    %cst_25 = arith.constant dense<0.000000e+00> : vector<8xf32>
    %61 = vector.multi_reduction <add>, %60, %cst_25 [1] : vector<8x128xf32> to vector<8xf32>
    %62 = vector.shape_cast %61 : vector<8xf32> to vector<8x1xf32>
    %cst_26 = arith.constant 0.00833333377 : f32
    %63 = vector.broadcast %cst_26 : f32 to vector<8x1xf32>
    %64 = arith.mulf %62, %63 : vector<8x1xf32>
    %65 = arith.mulf %59, %59 : vector<8x1xf32>
    %66 = arith.subf %64, %65 : vector<8x1xf32>
    %67 = vector.broadcast %59 : vector<8x1xf32> to vector<8x128xf32>
    %68 = arith.subf %55, %67 : vector<8x128xf32>
    %cst_27 = arith.constant 9.99999974E-6 : f32
    %69 = vector.broadcast %cst_27 : f32 to vector<8x1xf32>
    %70 = arith.addf %66, %69 : vector<8x1xf32>
    %71 = math.rsqrt %70 : vector<8x1xf32>
    %72 = vector.broadcast %71 : vector<8x1xf32> to vector<8x128xf32>
    %73 = arith.mulf %68, %72 : vector<8x128xf32>
    %c5 = arith.constant 5 : index
    %c0_28 = arith.constant 0 : index
    %74 = vector.load %arg4[%c5, %c0_28] : memref<16x256xf32, #tpu.memory_space<vmem>>, vector<1x128xf32>
    %75 = vector.broadcast %74 : vector<1x128xf32> to vector<8x128xf32>
    %76 = arith.mulf %73, %75 : vector<8x128xf32>
    %c6 = arith.constant 6 : index
    %c0_29 = arith.constant 0 : index
    %77 = vector.load %arg4[%c6, %c0_29] : memref<16x256xf32, #tpu.memory_space<vmem>>, vector<1x128xf32>
    %78 = vector.broadcast %77 : vector<1x128xf32> to vector<8x128xf32>
    %79 = arith.addf %76, %78 : vector<8x128xf32>
    %cst_30 = arith.constant 5.000000e-01 : f32
    %80 = vector.broadcast %cst_30 : f32 to vector<8x128xf32>
    %81 = arith.mulf %80, %79 : vector<8x128xf32>
    %cst_31 = arith.constant 2.000000e+00 : f32
    %82 = math.sqrt %cst_31 : f32
    %cst_32 = arith.constant 1.000000e+00 : f32
    %83 = arith.divf %cst_32, %82 : f32
    %84 = vector.broadcast %83 : f32 to vector<8x128xf32>
    %85 = arith.mulf %79, %84 : vector<8x128xf32>
    %86 = math.erf %85 : vector<8x128xf32>
    %cst_33 = arith.constant 1.000000e+00 : f32
    %87 = vector.broadcast %cst_33 : f32 to vector<8x128xf32>
    %88 = arith.addf %87, %86 : vector<8x128xf32>
    %89 = arith.mulf %81, %88 : vector<8x128xf32>
    %c512 = arith.constant 512 : index
    %c0_34 = arith.constant 0 : index
    %90 = vector.load %arg3[%c512, %c0_34] : memref<896x128xbf16, #tpu.memory_space<vmem>>, vector<128x128xbf16>
    %91 = arith.truncf %89 : vector<8x128xf32> to vector<8x128xbf16>
    %cst_35 = arith.constant dense<0.000000e+00> : vector<8x128xf32>
    %92 = tpu.matmul %91, %90, %cst_35 {dimension_numbers = #tpu.dot_dimension_numbers<[1], [0], [0], [1], [0, 0, 1, 1], [], []>} : vector<8x128xbf16>, vector<128x128xbf16>, vector<8x128xf32> -> vector<8x128xf32>
    %c8 = arith.constant 8 : index
    %c0_36 = arith.constant 0 : index
    %93 = vector.load %arg4[%c8, %c0_36] : memref<16x256xf32, #tpu.memory_space<vmem>>, vector<1x128xf32>
    %94 = vector.broadcast %93 : vector<1x128xf32> to vector<8x128xf32>
    %95 = arith.addf %92, %94 : vector<8x128xf32>
    %c640 = arith.constant 640 : index
    %c0_37 = arith.constant 0 : index
    %96 = vector.load %arg3[%c640, %c0_37] : memref<896x128xbf16, #tpu.memory_space<vmem>>, vector<128x128xbf16>
    %97 = arith.truncf %55 : vector<8x128xf32> to vector<8x128xbf16>
    %cst_38 = arith.constant dense<0.000000e+00> : vector<8x128xf32>
    %98 = tpu.matmul %97, %96, %cst_38 {dimension_numbers = #tpu.dot_dimension_numbers<[1], [0], [0], [1], [0, 0, 1, 1], [], []>} : vector<8x128xbf16>, vector<128x128xbf16>, vector<8x128xf32> -> vector<8x128xf32>
    %c7 = arith.constant 7 : index
    %c0_39 = arith.constant 0 : index
    %99 = vector.load %arg4[%c7, %c0_39] : memref<16x256xf32, #tpu.memory_space<vmem>>, vector<1x128xf32>
    %100 = vector.broadcast %99 : vector<1x128xf32> to vector<8x128xf32>
    %101 = arith.addf %98, %100 : vector<8x128xf32>
    %102 = arith.addf %95, %101 : vector<8x128xf32>
    %cst_40 = arith.constant dense<0.000000e+00> : vector<8xf32>
    %103 = vector.multi_reduction <add>, %102, %cst_40 [1] : vector<8x128xf32> to vector<8xf32>
    %104 = vector.shape_cast %103 : vector<8xf32> to vector<8x1xf32>
    %cst_41 = arith.constant 0.0111111114 : f32
    %105 = vector.broadcast %cst_41 : f32 to vector<8x1xf32>
    %106 = arith.mulf %104, %105 : vector<8x1xf32>
    %107 = arith.mulf %102, %102 : vector<8x128xf32>
    %cst_42 = arith.constant dense<0.000000e+00> : vector<8xf32>
    %108 = vector.multi_reduction <add>, %107, %cst_42 [1] : vector<8x128xf32> to vector<8xf32>
    %109 = vector.shape_cast %108 : vector<8xf32> to vector<8x1xf32>
    %cst_43 = arith.constant 0.0111111114 : f32
    %110 = vector.broadcast %cst_43 : f32 to vector<8x1xf32>
    %111 = arith.mulf %109, %110 : vector<8x1xf32>
    %112 = arith.mulf %106, %106 : vector<8x1xf32>
    %113 = arith.subf %111, %112 : vector<8x1xf32>
    %114 = vector.broadcast %106 : vector<8x1xf32> to vector<8x128xf32>
    %115 = arith.subf %102, %114 : vector<8x128xf32>
    %cst_44 = arith.constant 9.99999974E-6 : f32
    %116 = vector.broadcast %cst_44 : f32 to vector<8x1xf32>
    %117 = arith.addf %113, %116 : vector<8x1xf32>
    %118 = math.rsqrt %117 : vector<8x1xf32>
    %119 = vector.broadcast %118 : vector<8x1xf32> to vector<8x128xf32>
    %120 = arith.mulf %115, %119 : vector<8x128xf32>
    %c9 = arith.constant 9 : index
    %c0_45 = arith.constant 0 : index
    %121 = vector.load %arg4[%c9, %c0_45] : memref<16x256xf32, #tpu.memory_space<vmem>>, vector<1x128xf32>
    %122 = vector.broadcast %121 : vector<1x128xf32> to vector<8x128xf32>
    %123 = arith.mulf %120, %122 : vector<8x128xf32>
    %c10 = arith.constant 10 : index
    %c0_46 = arith.constant 0 : index
    %124 = vector.load %arg4[%c10, %c0_46] : memref<16x256xf32, #tpu.memory_space<vmem>>, vector<1x128xf32>
    %125 = vector.broadcast %124 : vector<1x128xf32> to vector<8x128xf32>
    %126 = arith.addf %123, %125 : vector<8x128xf32>
    %cst_47 = arith.constant 5.000000e-01 : f32
    %127 = vector.broadcast %cst_47 : f32 to vector<8x128xf32>
    %128 = arith.mulf %127, %126 : vector<8x128xf32>
    %cst_48 = arith.constant 2.000000e+00 : f32
    %129 = math.sqrt %cst_48 : f32
    %cst_49 = arith.constant 1.000000e+00 : f32
    %130 = arith.divf %cst_49, %129 : f32
    %131 = vector.broadcast %130 : f32 to vector<8x128xf32>
    %132 = arith.mulf %126, %131 : vector<8x128xf32>
    %133 = math.erf %132 : vector<8x128xf32>
    %cst_50 = arith.constant 1.000000e+00 : f32
    %134 = vector.broadcast %cst_50 : f32 to vector<8x128xf32>
    %135 = arith.addf %134, %133 : vector<8x128xf32>
    %136 = arith.mulf %128, %135 : vector<8x128xf32>
    %c768 = arith.constant 768 : index
    %c0_51 = arith.constant 0 : index
    %137 = vector.load %arg3[%c768, %c0_51] : memref<896x128xbf16, #tpu.memory_space<vmem>>, vector<128x128xbf16>
    %138 = arith.truncf %136 : vector<8x128xf32> to vector<8x128xbf16>
    %cst_52 = arith.constant dense<0.000000e+00> : vector<8x128xf32>
    %139 = tpu.matmul %138, %137, %cst_52 {dimension_numbers = #tpu.dot_dimension_numbers<[1], [0], [0], [1], [0, 0, 1, 1], [], []>} : vector<8x128xbf16>, vector<128x128xbf16>, vector<8x128xf32> -> vector<8x128xf32>
    %c11 = arith.constant 11 : index
    %c0_53 = arith.constant 0 : index
    %140 = vector.load %arg4[%c11, %c0_53] : memref<16x256xf32, #tpu.memory_space<vmem>>, vector<1x128xf32>
    %141 = vector.broadcast %140 : vector<1x128xf32> to vector<8x128xf32>
    %142 = arith.addf %139, %141 : vector<8x128xf32>
    %143 = arith.addf %142, %102 : vector<8x128xf32>
    %c0_54 = arith.constant 0 : index
    %c0_55 = arith.constant 0 : index
    %144 = vector.load %arg5[%c0_54, %c0_55] : memref<8x128xf32, #tpu.memory_space<vmem>>, vector<8x128xf32>
    tpu.vector_store %arg5[%c0_54, %c0_55], %143 {strides = array<i32>} : memref<8x128xf32, #tpu.memory_space<vmem>>, vector<8x128xf32>,
    return
  }
  func.func @transform_0(%arg0: i32) -> (i32, i32) {
    %c0_i32 = arith.constant 0 : i32
    %c0_i32_0 = arith.constant 0 : i32
    return %arg0, %c0_i32 : i32, i32
  }
  func.func @transform_1(%arg0: i32) -> (i32, i32) {
    %c0_i32 = arith.constant 0 : i32
    %c0_i32_0 = arith.constant 0 : i32
    %c0_i32_1 = arith.constant 0 : i32
    return %c0_i32, %c0_i32_0 : i32, i32
  }
  func.func @transform_2(%arg0: i32) -> (i32, i32) {
    %c0_i32 = arith.constant 0 : i32
    %c0_i32_0 = arith.constant 0 : i32
    %c0_i32_1 = arith.constant 0 : i32
    return %c0_i32, %c0_i32_0 : i32, i32
  }
  func.func @transform_3(%arg0: i32) -> (i32, i32) {
    %c0_i32 = arith.constant 0 : i32
    %c0_i32_0 = arith.constant 0 : i32
    %c0_i32_1 = arith.constant 0 : i32
    return %c0_i32, %c0_i32_0 : i32, i32
  }
  func.func @transform_4(%arg0: i32) -> (i32, i32) {
    %c0_i32 = arith.constant 0 : i32
    %c0_i32_0 = arith.constant 0 : i32
    return %arg0, %c0_i32 : i32, i32
  }
}

</mosaic_0001>

<bundles_post_ra>
// kernel: fc_wh_pallas.1
= control target key start
LH: loop header
LB: loop body
LE: loop exit
PB: predicated region body
PF: predicated region fallthrough
CT: control target
= control target key end

     0   :  { %9 = vsyncpa [#allocation3], 0  ;;  %s1689_s0 = inlined_call_operand.vmem [shape: bf16[8,256], index: 0, kind: input, shape index: {}]   ;;  %s1690_s1 = inlined_call_operand.hbm [shape: bf16[256,256], index: 1, kind: input, shape index: {}]   ;;  %s1691_s2 = inlined_call_operand.hbm [shape: bf16[896,128], index: 2, kind: input, shape index: {}]   ;;  %s1692_s3 = inlined_call_operand.vmem [shape: f32[16,256], index: 3, kind: input, shape index: {}]   ;;  %s1693_s4 = inlined_call_operand.hbm [shape: f32[8,128], index: 4, kind: output, shape index: {}]  }
   0x1   :  { %10 = vsyncpa [#allocation6], 0 }
   0x2   :  { %11 = vsyncpa [#allocation4], 0  ;;  %s1516_s15 = smov [#allocation2]   ;;  %s1444_s19 = scalar_lea.hbm %s1690_s1, 4096 }
   0x3   :  { %s19_s16 = sshll.u32 %s1516_s15, 4  ;;  %p1445_p0 = scmp.ne.s32.totalorder %s1690_s1, %s1444_s19  ;;  %s20_s16 = int_to_ptr.vmem [resolvable:$true] %s19_s16 }
   0x4   :  { %p1448_p1 = scmp.lt.u32.totalorder %s1444_s19, %s1690_s1 }
   0x6   :  { %p1450_p2 = pnand %p1448_p1, %p1445_p0 }
   0x8   :  { %1453 = shalt.err (!%p1450_p2)
}
   0x9   :  { %s1454_s24 = scalar_lea.vmem %s20_s16, 4096  ;;  %p1459_p4 = scmp.lt.s32.totalorder %s20_s16, %s20_s16 }
   0xa   :  { %p1455_p3 = scmp.ne.s32.totalorder %s20_s16, %s1454_s24  ;;  %p1460_p5 = scmp.lt.s32.totalorder %s1454_s24, %s1454_s24 }
   0xc   :  { %p1461_p6 = por %p1460_p5, %p1459_p4 }
   0xe   :  { %p1462_p7 = pnand %p1461_p6, %p1455_p3 }
  0x10   :  { %1465 = shalt.err (!%p1462_p7)
}
  0x11   :  { %s1517_s25 = smov 128   ;;  %s1518_s26 = smov 8  }
  0x12   :  { %25 = dma.hbm_to_vmem [thread:$0]  %s1690_s1, 4096, %s20_s16, [#allocation3], %s1517_s25, %s1517_s25, %s1518_s26  }
  0x13   :  { %s1519_s29 = smov [#allocation5]   ;;  %s1466_s7 = scalar_lea.hbm %s1691_s2, 7168 }
  0x14   :  { %s31_s30 = sshll.u32 %s1519_s29, 4  ;;  %p1467_p8 = scmp.ne.s32.totalorder %s1691_s2, %s1466_s7  ;;  %s32_s30 = int_to_ptr.vmem [resolvable:$true] %s31_s30 }
  0x15   :  { %p1470_p9 = scmp.lt.u32.totalorder %s1466_s7, %s1691_s2 }
  0x17   :  { %p1472_p10 = pnand %p1470_p9, %p1467_p8 }
  0x19   :  { %1475 = shalt.err (!%p1472_p10)
}
  0x1a   :  { %s1476_s12 = scalar_lea.vmem %s32_s30, 7168  ;;  %p1481_p12 = scmp.lt.s32.totalorder %s32_s30, %s32_s30 }
  0x1b   :  { %p1477_p11 = scmp.ne.s32.totalorder %s32_s30, %s1476_s12  ;;  %p1482_p13 = scmp.lt.s32.totalorder %s1476_s12, %s1476_s12 }
  0x1d   :  { %p1483_p0 = por %p1482_p13, %p1481_p12 }
  0x1f   :  { %p1484_p1 = pnand %p1483_p0, %p1477_p11 }
  0x21   :  { %1487 = shalt.err (!%p1484_p1)
}
  0x22   :  { %s1520_s1 = smov 64   ;;  %s1521_s13 = smov 4  }
  0x23   :  { %37 = dma.hbm_to_vmem [thread:$0]  %s1691_s2, 7168, %s32_s30, [#allocation6], %s1520_s1, %s1520_s1, %s1521_s13  }
  0x24   :  { %1510 = dma.done.wait [#allocation3], 4096  }
  0x25   :  { %1511 = vsyncadd [#allocation3], 4294963200 }
  0x26   :  { %1512 = dma.done.wait [#allocation6], 7168  }
  0x27   :  { %1513 = vsyncadd [#allocation6], 4294960128  ;;  %v1324_v0 = vld [vmem:[#allocation2 + $0x4] ss:$8 sps:$4 sm:$0xff]   ;;  %v1326_v1 = vld [vmem:[#allocation2] ss:$8 sps:$4 sm:$0xff]   ;;  %v84_v35 = vlaneseq }
  0x28   :  { %261 = vmatprep.subr.bf16.mxu0 %v1324_v0  ;;  %v1327_v2 = vld [vmem:[#allocation2 + $0x14] ss:$8 sps:$4 sm:$0xff]   ;;  %v1329_v3 = vld [vmem:[#allocation2 + $0x10] ss:$8 sps:$4 sm:$0xff]   ;;  %v1330_v4 = vld [vmem:[#allocation2 + $0x24] ss:$8 sps:$4 sm:$0xff]  }
  0x29   :  { %262 = vmatpush1.bf16.msra.mxu0 %v1326_v1  ;;  %v1332_v5 = vld [vmem:[#allocation2 + $0x20] ss:$8 sps:$4 sm:$0xff]   ;;  %v1333_v6 = vld [vmem:[#allocation2 + $0x34] ss:$8 sps:$4 sm:$0xff]   ;;  %v1335_v7 = vld [vmem:[#allocation2 + $0x30] ss:$8 sps:$4 sm:$0xff]  }
  0x2a   :  { %263 = vmatprep.subr.bf16.mxu0 %v1327_v2  ;;  %v1336_v8 = vld [vmem:[#allocation2 + $0x44] ss:$8 sps:$4 sm:$0xff]   ;;  %v1338_v9 = vld [vmem:[#allocation2 + $0x40] ss:$8 sps:$4 sm:$0xff]   ;;  %v1339_v10 = vld [vmem:[#allocation2 + $0x54] ss:$8 sps:$4 sm:$0xff]  }
  0x2b   :  { %v1341_v11 = vld [vmem:[#allocation2 + $0x50] ss:$8 sps:$4 sm:$0xff]   ;;  %v1342_v12 = vld [vmem:[#allocation2 + $0x64] ss:$8 sps:$4 sm:$0xff]   ;;  %v1344_v13 = vld [vmem:[#allocation2 + $0x60] ss:$8 sps:$4 sm:$0xff]  }
  0x2c   :  { %v47_v14 = vld [vmem:[%s1689_s0] sm:$0xff]  ;;  %v1345_v15 = vld [vmem:[#allocation2 + $0x74] ss:$8 sps:$4 sm:$0xff]   ;;  %v1347_v17 = vld [vmem:[#allocation2 + $0x70] ss:$8 sps:$4 sm:$0xff]   ;;  %v85_v36 = vshrl.u32 %v84_v35, 7 }
  0x2d   :  { %264 = vmatpush1.bf16.msra.mxu0 %v1329_v3  ;;  %v1087_v16 = vcombine.high %v47_v14, %v47_v14  ;;  %v1348_v18 = vld [vmem:[#allocation2 + $0x84] ss:$8 sps:$4 sm:$0xff]   ;;  %v1350_v19 = vld [vmem:[#allocation2 + $0x80] ss:$8 sps:$4 sm:$0xff]   ;;  %v1351_v20 = vld [vmem:[#allocation2 + $0x94] ss:$8 sps:$4 sm:$0xff]   ;;  %v1086_v34 = vcombine.low %v47_v14, %v47_v14  ;;  %v48_v42 = vunpack.c.l.bf16 %v47_v14  ;;  %v49_v44 = vunpack.c.h.bf16 %v47_v14 }
  0x2e   :  { %265 = vmatprep.subr.bf16.mxu0 %v1330_v4  ;;  %v1353_v21 = vld [vmem:[#allocation2 + $0x90] ss:$8 sps:$4 sm:$0xff]   ;;  %v1354_v22 = vld [vmem:[#allocation2 + $0xa4] ss:$8 sps:$4 sm:$0xff]   ;;  %v1356_v23 = vld [vmem:[#allocation2 + $0xa0] ss:$8 sps:$4 sm:$0xff]  }
  0x2f   :  { %293 = vmatprep.mubr.bf16.mxu0 %v1087_v16  ;;  %v1357_v24 = vld [vmem:[#allocation2 + $0xb4] ss:$8 sps:$4 sm:$0xff]   ;;  %v1359_v25 = vld [vmem:[#allocation2 + $0xb0] ss:$8 sps:$4 sm:$0xff]   ;;  %v1360_v26 = vld [vmem:[#allocation2 + $0xc4] ss:$8 sps:$4 sm:$0xff]  }
  0x30   :  { %v1362_v27 = vld [vmem:[#allocation2 + $0xc0] ss:$8 sps:$4 sm:$0xff]   ;;  %v1363_v28 = vld [vmem:[#allocation2 + $0xd4] ss:$8 sps:$4 sm:$0xff]   ;;  %v1365_v29 = vld [vmem:[#allocation2 + $0xd0] ss:$8 sps:$4 sm:$0xff]  }
  0x31   :  { %266 = vmatpush1.bf16.msra.mxu0 %v1332_v5  ;;  %v1366_v30 = vld [vmem:[#allocation2 + $0xe4] ss:$8 sps:$4 sm:$0xff]   ;;  %v1368_v31 = vld [vmem:[#allocation2 + $0xe0] ss:$8 sps:$4 sm:$0xff]   ;;  %v1369_v32 = vld [vmem:[#allocation2 + $0xf4] ss:$8 sps:$4 sm:$0xff]  }
  0x32   :  { %267 = vmatprep.subr.bf16.mxu0 %v1333_v6  ;;  %v1371_v33 = vld [vmem:[#allocation2 + $0xf0] ss:$8 sps:$4 sm:$0xff]   ;;  %v1577_v37 = vsub.s32 0, %v85_v36  ;;  %v82_v38 = vld [vmem:[%s1692_s3] ss:$8 sm:$0x3] }
  0x33   :  { %v1582_v39 = vsub.s32 1, %v85_v36  ;;  %v1374_v56 = vld [vmem:[#allocation5 + $0xc0] sm:$0xff]   ;;  %v1376_v58 = vld [vmem:[#allocation5 + $0xc8] sm:$0xff]   ;;  %v1378_v60 = vld [vmem:[#allocation5 + $0xd0] sm:$0xff]   ;;  %vm1523_vm0 = vmmov 0   ;;  %s1524_s13 = smov [#allocation7]  }
  0x34   :  { %v87_v40 = vrot.slane %v82_v38, %v1577_v37  ;;  %v1375_v57 = vld [vmem:[#allocation5 + $0x80] sm:$0xff]   ;;  %1178 = vmatprep.subr.bf16.mxu1 %v1374_v56  ;;  %v1377_v59 = vld [vmem:[#allocation5 + $0x88] sm:$0xff]   ;;  %v1379_v61 = vld [vmem:[#allocation5 + $0x90] sm:$0xff]   ;;  %s1076_s14 = sshll.u32 %s1524_s13, 4  ;;  %s1077_s14 = int_to_ptr.vmem [resolvable:$true] %s1076_s14 }
  0x35   :  { %268 = vmatpush1.bf16.msra.mxu0 %v1335_v7  ;;  %v91_v41 = vrot.slane %v82_v38, %v1582_v39  ;;  %1179 = vmatpush3.bf16.msra.mxu1 %v1375_v57  ;;  %v1380_v62 = vld [vmem:[#allocation5 + $0xd8] sm:$0xff]   ;;  %v1382_v0 = vld [vmem:[#allocation5 + $0xe0] sm:$0xff]   ;;  %v1384_v2 = vld [vmem:[#allocation5 + $0xe8] sm:$0xff]   ;;  %s1488_s15 = scalar_lea.vmem %s1077_s14, 128  ;;  %p1493_p3 = scmp.lt.s32.totalorder %s1077_s14, %s1077_s14 }
  0x36   :  { %269 = vmatprep.subr.bf16.mxu0 %v1336_v8  ;;  %1180 = vmatprep.subr.bf16.mxu1 %v1376_v58  ;;  %v1381_v63 = vld [vmem:[#allocation5 + $0x98] sm:$0xff]   ;;  %v1383_v1 = vld [vmem:[#allocation5 + $0xa0] sm:$0xff]   ;;  %v1385_v3 = vld [vmem:[#allocation5 + $0xa8] sm:$0xff]   ;;  %p1489_p2 = scmp.ne.s32.totalorder %s1077_s14, %s1488_s15  ;;  %p1494_p4 = scmp.lt.s32.totalorder %s1488_s15, %s1488_s15 }
  0x37   :  { %v1386_v4 = vld [vmem:[#allocation5 + $0xf0] sm:$0xff]   ;;  %v1388_v6 = vld [vmem:[#allocation5 + $0xf8] sm:$0xff]   ;;  %v1390_v8 = vld [vmem:[#allocation5 + $0x40] sm:$0xff]  }
  0x38   :  { %v1387_v5 = vld [vmem:[#allocation5 + $0xb0] sm:$0xff]   ;;  %v1389_v7 = vld [vmem:[#allocation5 + $0xb8] sm:$0xff]   ;;  %v1120_v16 = vld [vmem:[%s1692_s3 + $0x1] ss:$8 sm:$0x3]  ;;  %p1495_p5 = por %p1494_p4, %p1493_p3 }
  0x39   :  { %270 = vmatpush1.bf16.msra.mxu0 %v1338_v9  ;;  %1181 = vmatpush3.bf16.msra.mxu1 %v1377_v59  ;;  %v1402_v56 = vld [vmem:[#allocation5 + $0x70] sm:$0xff]   ;;  %v1404_v58 = vld [vmem:[#allocation5 + $0x78] sm:$0xff]  }
  0x3a   :  { %271 = vmatprep.subr.bf16.mxu0 %v1339_v10  ;;  %1182 = vmatprep.subr.bf16.mxu1 %v1378_v60  ;;  %v1403_v57 = vld [vmem:[#allocation5 + $0x30] sm:$0xff]   ;;  %v1405_v59 = vld [vmem:[#allocation5 + $0x38] sm:$0xff]   ;;  %p1496_p6 = pnand %p1495_p5, %p1489_p2 }
  0x3d   :  { %272 = vmatpush1.bf16.msra.mxu0 %v1341_v11  ;;  %1183 = vmatpush3.bf16.msra.mxu1 %v1379_v61 }
  0x3e   :  { %273 = vmatprep.subr.bf16.mxu0 %v1342_v12  ;;  %1184 = vmatprep.subr.bf16.mxu1 %v1380_v62 }
  0x41   :  { %274 = vmatpush1.bf16.msra.mxu0 %v1344_v13  ;;  %1185 = vmatpush3.bf16.msra.mxu1 %v1381_v63 }
  0x42   :  { %275 = vmatprep.subr.bf16.mxu0 %v1345_v15  ;;  %1186 = vmatprep.subr.bf16.mxu1 %v1382_v0 }
  0x45   :  { %276 = vmatpush1.bf16.msra.mxu0 %v1347_v17  ;;  %1187 = vmatpush3.bf16.msra.mxu1 %v1383_v1  ;;  %v1121_v17 = vld [vmem:[%s1692_s3 + $0x2] ss:$8 sm:$0x3] }
  0x46   :  { %277 = vmatprep.subr.bf16.mxu0 %v1348_v18  ;;  %1188 = vmatprep.subr.bf16.mxu1 %v1384_v2 }
  0x49   :  { %278 = vmatpush1.bf16.msra.mxu0 %v1350_v19  ;;  %1189 = vmatpush3.bf16.msra.mxu1 %v1385_v3  ;;  %v396_v3 = vld [vmem:[%s1692_s3 + $0x4] ss:$0 sm:$0xff] }
  0x4a   :  { %279 = vmatprep.subr.bf16.mxu0 %v1351_v20  ;;  %1190 = vmatprep.subr.bf16.mxu1 %v1386_v4  ;;  %v328_v20 = vrot.slane %v1120_v16, %v1577_v37  ;;  %v567_v4 = vld [vmem:[%s1692_s3 + $0x3] ss:$0 sm:$0xff] }
  0x4d   :  { %280 = vmatpush1.bf16.msra.mxu0 %v1353_v21  ;;  %1191 = vmatpush3.bf16.msra.mxu1 %v1387_v5  ;;  %v332_v21 = vrot.slane %v1120_v16, %v1582_v39  ;;  %v1409_v16 = vld [vmem:[#allocation5 + $0x118] sm:$0xff]  }
  0x4e   :  { %281 = vmatprep.subr.bf16.mxu0 %v1354_v22  ;;  %1192 = vmatprep.subr.bf16.mxu1 %v1388_v6 }
  0x51   :  { %282 = vmatpush1.bf16.msra.mxu0 %v1356_v23  ;;  %1193 = vmatpush3.bf16.msra.mxu1 %v1389_v7 }
  0x52   :  { %283 = vmatprep.subr.bf16.mxu0 %v1357_v24  ;;  %1200 = vmatprep.subr.bf16.mxu1 %v1390_v8  ;;  %v343_v24 = vrot.slane %v1121_v17, %v1577_v37 }
  0x55   :  { %284 = vmatpush1.bf16.msra.mxu0 %v1359_v25  ;;  %v347_v25 = vrot.slane %v1121_v17, %v1582_v39  ;;  %v1410_v17 = vld [vmem:[#allocation5 + $0x120] sm:$0xff]  }
  0x56   :  { %285 = vmatprep.subr.bf16.mxu0 %v1360_v26 }
  0x59   :  { %286 = vmatpush1.bf16.msra.mxu0 %v1362_v27 }
  0x5a   :  { %287 = vmatprep.subr.bf16.mxu0 %v1363_v28 }
  0x5d   :  { %288 = vmatpush1.bf16.msra.mxu0 %v1365_v29 }
  0x5e   :  { %289 = vmatprep.subr.bf16.mxu0 %v1366_v30 }
  0x61   :  { %290 = vmatpush1.bf16.msra.mxu0 %v1368_v31 }
  0x62   :  { %291 = vmatprep.subr.bf16.mxu0 %v1369_v32 }
  0x65   :  { %292 = vmatpush1.bf16.msra.mxu0 %v1371_v33 }
  0x68   :  { %294 = vmatmul.mubr.bf16.vlgmr.msra.gmra.mrb[0].mxu0 %v1086_v34 }
 0x13b   :  { %v295_v43 = vpop.f32.mrb[0].mxu0 }
 0x13c   :  { %v296_v45 = vadd.f32 %v295_v43, %v87_v40  ;;  %v297_v46 = vpop.f32.mrb[1].mxu0  ;;  %v1391_v43 = vld [vmem:[#allocation5] sm:$0xff]  }
 0x13d   :  { %v298_v47 = vadd.f32 %v297_v46, %v91_v41  ;;  %v299_v48 = vpop.f32.mrb[2].mxu0  ;;  %v1393_v46 = vld [vmem:[#allocation5 + $0x8] sm:$0xff]  }
 0x13e   :  { %v1586_v49 = vadd.f32 %v296_v45, %v48_v42  ;;  %v300_v50 = vpop.f32.mrb[3].mxu0  ;;  %v1395_v48 = vld [vmem:[#allocation5 + $0x10] sm:$0xff]  }
 0x13f   :  { %v1588_v51 = vadd.f32 %v298_v47, %v49_v44  ;;  %v1392_v44 = vld [vmem:[#allocation5 + $0x48] sm:$0xff]   ;;  %v1394_v47 = vld [vmem:[#allocation5 + $0x50] sm:$0xff]   ;;  %v1396_v50 = vld [vmem:[#allocation5 + $0x58] sm:$0xff]  }
 0x140   :  { %v308_v53 = vmul.f32 %v1586_v49, %v1586_v49  ;;  %v565_v60 = vpack.c.bf16 %v1586_v49, %v1586_v49 }
 0x141   :  { %v304_v52 = vadd.f32 %v1588_v51, %v1586_v49  ;;  %v309_v54 = vmul.f32 %v1588_v51, %v1588_v51  ;;  %v566_v45 = vpack.c.bf16 %v1588_v51, %v1588_v51 }
 0x143   :  { %305 = vadd.xlane.f32.xlu0 %v304_v52  ;;  %v310_v55 = vadd.f32 %v309_v54, %v308_v53  ;;  %v1397_v52 = vld [vmem:[#allocation5 + $0x18] sm:$0xff]   ;;  %v1398_v53 = vld [vmem:[#allocation5 + $0x60] sm:$0xff]  }
 0x144   :  { %v1399_v54 = vld [vmem:[#allocation5 + $0x20] sm:$0xff]  }
 0x147   :  { %311 = vadd.xlane.f32.xlu0 %v310_v55  ;;  %v1400_v55 = vld [vmem:[#allocation5 + $0x68] sm:$0xff]  }
 0x1d0   :  { %v306_v9 = vpop.xlane.xlu0 %305 }
 0x1d1   :  { %v307_v10 = vmul.f32 0.006666667, %v306_v9 }
 0x1d3   :  { %v314_v12 = vmul.f32 %v307_v10, %v307_v10  ;;  %v316_v18 = vsub.f32 %v1586_v49, %v307_v10  ;;  %v317_v19 = vsub.f32 %v1588_v51, %v307_v10  ;;  %v1401_v51 = vld [vmem:[#allocation5 + $0x28] sm:$0xff]  }
 0x1d4   :  { %v312_v11 = vpop.xlane.xlu0 %311 }
 0x1d5   :  { %v313_v13 = vmul.f32 0.006666667, %v312_v11 }
 0x1d7   :  { %v315_v14 = vsub.f32 %v313_v13, %v314_v12  ;;  %v1406_v12 = vld [vmem:[#allocation5 + $0x100] sm:$0xff]   ;;  %v1522_v13 = vmov 0.0  }
 0x1d8   :  { %1249 = vmatprep.subr.bf16.mxu0 %v1522_v13  ;;  %1265 = vmatprep.mubr.msk.bf16.mxu0 %vm1523_vm0, %v1522_v13 }
 0x1d9   :  { %v318_v15 = vadd.f32 1e-05, %v315_v14  ;;  %1250 = vmatpush3.bf16.msra.mxu0 %v1406_v12  ;;  %v1407_v14 = vld [vmem:[#allocation5 + $0x108] sm:$0xff]   ;;  %v953_v12 = vld [vmem:[%s1692_s3 + $0x11] ss:$0 sm:$0xff] }
 0x1da   :  { %1251 = vmatprep.subr.bf16.mxu0 %v1522_v13 }
 0x1db   :  { %1430 = vrsqrt.f32 %v318_v15  ;;  %v1408_v15 = vld [vmem:[#allocation5 + $0x110] sm:$0xff]  }
 0x1dd   :  { %1252 = vmatpush3.bf16.msra.mxu0 %v1407_v14 }
 0x1de   :  { %1253 = vmatprep.subr.bf16.mxu0 %v1522_v13 }
 0x1e1   :  { %1254 = vmatpush3.bf16.msra.mxu0 %v1408_v15 }
 0x1e2   :  { %1255 = vmatprep.subr.bf16.mxu0 %v1522_v13 }
 0x1e5   :  { %v1431_v22 = vpop.eup %1430  ;;  %1256 = vmatpush3.bf16.msra.mxu0 %v1409_v16 }
 0x1e6   :  { %v321_v23 = vmul.f32 %v1431_v22, %v317_v19  ;;  %v320_v26 = vmul.f32 %v1431_v22, %v316_v18  ;;  %1257 = vmatprep.subr.bf16.mxu0 %v1522_v13  ;;  %v1411_v18 = vld [vmem:[#allocation5 + $0x128] sm:$0xff]   ;;  %v1412_v19 = vld [vmem:[#allocation5 + $0x130] sm:$0xff]  }
 0x1e8   :  { %v336_v27 = vmul.f32 %v332_v21, %v321_v23  ;;  %v335_v28 = vmul.f32 %v328_v20, %v320_v26  ;;  %v1413_v20 = vld [vmem:[#allocation5 + $0x138] sm:$0xff]  }
 0x1e9   :  { %1258 = vmatpush3.bf16.msra.mxu0 %v1410_v17 }
 0x1ea   :  { %v351_v29 = vadd.f32 %v347_v25, %v336_v27  ;;  %v350_v30 = vadd.f32 %v343_v24, %v335_v28  ;;  %1259 = vmatprep.subr.bf16.mxu0 %v1522_v13 }
 0x1ec   :  { %v355_v31 = vmul.f32 0.70710677, %v351_v29  ;;  %v354_v32 = vmul.f32 0.70710677, %v350_v30  ;;  %v353_v35 = vmul.f32 0.5, %v351_v29  ;;  %v352_v38 = vmul.f32 0.5, %v350_v30 }
 0x1ed   :  { %1260 = vmatpush3.bf16.msra.mxu0 %v1411_v18  ;;  %v718_v30 = vld [vmem:[%s1692_s3 + $0x5] ss:$0 sm:$0xff] }
 0x1ee   :  { %1432 = verf.f32 %v355_v31  ;;  %1261 = vmatprep.subr.bf16.mxu0 %v1522_v13 }
 0x1ef   :  { %1434 = verf.f32 %v354_v32  ;;  %v720_v32 = vld [vmem:[%s1692_s3 + $0x6] ss:$0 sm:$0xff] }
 0x1f1   :  { %1262 = vmatpush3.bf16.msra.mxu0 %v1412_v19 }
 0x1f2   :  { %1263 = vmatprep.subr.bf16.mxu0 %v1522_v13 }
 0x1f5   :  { %1264 = vmatpush3.bf16.msra.mxu0 %v1413_v20 }
 0x1f6   :  { %1269 = vmatprep.subr.bf16.mxu0 %v1522_v13 }
 0x1f8   :  { %v1433_v33 = vpop.eup %1432 }
 0x1f9   :  { %v1435_v34 = vpop.eup %1434  ;;  %v359_v36 = vadd.f32 1.0, %v1433_v33 }
 0x1fa   :  { %v358_v40 = vadd.f32 1.0, %v1435_v34 }
 0x1fb   :  { %v361_v41 = vmul.f32 %v359_v36, %v353_v35 }
 0x1fc   :  { %v360_v42 = vmul.f32 %v358_v40, %v352_v38 }
 0x1fd   :  { %v395_v37 = vpack.c.bf16 %v361_v41, %v361_v41 }
 0x1fe   :  { %v394_v39 = vpack.c.bf16 %v360_v42, %v360_v42  ;;  %v1414_v42 = vld [vmem:[#allocation5 + $0x140] sm:$0xff]  }
 0x1ff   :  { %525 = vmatprep.mubr.bf16.mxu1 %v395_v37 }
 0x200   :  { %526 = vmatmul.mubr.bf16.vlgmr.msra.gmra.mrb[0].mxu1 %v394_v39  ;;  %v1416_v39 = vld [vmem:[#allocation5 + $0x150] sm:$0xff]  }
 0x201   :  { %1201 = vmatpush3.bf16.msra.mxu1 %v1391_v43  ;;  %696 = vmatprep.mubr.bf16.mxu1 %v566_v45  ;;  %v1415_v43 = vld [vmem:[#allocation5 + $0x148] sm:$0xff]   ;;  %v1418_v45 = vld [vmem:[#allocation5 + $0x160] sm:$0xff]  }
 0x202   :  { %1202 = vmatprep.subr.bf16.mxu1 %v1392_v44  ;;  %v1417_v44 = vld [vmem:[#allocation5 + $0x158] sm:$0xff]  }
 0x205   :  { %1203 = vmatpush3.bf16.msra.mxu1 %v1393_v46  ;;  %v1419_v46 = vld [vmem:[#allocation5 + $0x168] sm:$0xff]  }
 0x206   :  { %1204 = vmatprep.subr.bf16.mxu1 %v1394_v47  ;;  %v1420_v47 = vld [vmem:[#allocation5 + $0x170] sm:$0xff]  }
 0x209   :  { %1205 = vmatpush3.bf16.msra.mxu1 %v1395_v48  ;;  %v1421_v48 = vld [vmem:[#allocation5 + $0x178] sm:$0xff]  }
 0x20a   :  { %1206 = vmatprep.subr.bf16.mxu1 %v1396_v50 }
 0x20d   :  { %1207 = vmatpush3.bf16.msra.mxu1 %v1397_v52  ;;  %v744_v52 = vld [vmem:[%s1692_s3 + $0x10] ss:$0 sm:$0xff] }
 0x20e   :  { %1208 = vmatprep.subr.bf16.mxu1 %v1398_v53  ;;  %v850_v53 = vld [vmem:[%s1692_s3 + $0x7] ss:$0 sm:$0xff] }
 0x211   :  { %1209 = vmatpush3.bf16.msra.mxu1 %v1399_v54  ;;  %v1309_v54 = vadd.f32 %v850_v53, %v744_v52 }
 0x212   :  { %1210 = vmatprep.subr.bf16.mxu1 %v1400_v55 }
 0x215   :  { %1211 = vmatpush3.bf16.msra.mxu1 %v1401_v51 }
 0x216   :  { %1212 = vmatprep.subr.bf16.mxu1 %v1402_v56 }
 0x219   :  { %1213 = vmatpush3.bf16.msra.mxu1 %v1403_v57 }
 0x21a   :  { %1214 = vmatprep.subr.bf16.mxu1 %v1404_v58 }
 0x21d   :  { %1215 = vmatpush3.bf16.msra.mxu1 %v1405_v59 }
 0x21e   :  { %1289 = vmatprep.subr.bf16.mxu1 %v1522_v13 }
 0x220   :  { %697 = vmatmul.mubr.bf16.vlgmr.msra.gmra.mrb[4].mxu1 %v565_v60  ;;  %v1422_v60 = vld [vmem:[#allocation5 + $0x180] sm:$0xff]  }
 0x221   :  { %1305 = vmatprep.mubr.msk.bf16.mxu1 %vm1523_vm0, %v1522_v13  ;;  %1290 = vmatpush3.bf16.msra.mxu1 %v1422_v60 }
 0x222   :  { %1291 = vmatprep.subr.bf16.mxu1 %v1522_v13 }
 0x2d3   :  { %v1194_v61 = vpop.f32.mrb[0].mxu1 }
 0x2d4   :  { %v1195_v62 = vpop.f32.mrb[1].mxu1 }
 0x2d5   :  { %v1196_v63 = vadd.f32 %v1195_v62, %v1194_v61  ;;  %v1197_v0 = vpop.f32.mrb[2].mxu1  ;;  %v1423_v61 = vld [vmem:[#allocation5 + $0x188] sm:$0xff]   ;;  %v1424_v62 = vld [vmem:[#allocation5 + $0x190] sm:$0xff]  }
 0x2d6   :  { %v1198_v1 = vpop.f32.mrb[3].mxu1  ;;  %1292 = vmatpush3.bf16.msra.mxu1 %v1423_v61  ;;  %v1426_v0 = vld [vmem:[#allocation5 + $0x1a0] sm:$0xff]  }
 0x2d7   :  { %v528_v49 = vadd.f32 %v1196_v63, %v396_v3  ;;  %1293 = vmatprep.subr.bf16.mxu1 %v1522_v13  ;;  %v1425_v63 = vld [vmem:[#allocation5 + $0x198] sm:$0xff]   ;;  %v1427_v1 = vld [vmem:[#allocation5 + $0x1a8] sm:$0xff]  }
 0x2d8   :  { %v1429_v3 = vld [vmem:[#allocation5 + $0x1b8] sm:$0xff]  }
 0x2da   :  { %1294 = vmatpush3.bf16.msra.mxu1 %v1424_v62 }
 0x2db   :  { %1295 = vmatprep.subr.bf16.mxu1 %v1522_v13 }
 0x2de   :  { %1296 = vmatpush3.bf16.msra.mxu1 %v1425_v63 }
 0x2df   :  { %1297 = vmatprep.subr.bf16.mxu1 %v1522_v13 }
 0x2e2   :  { %1298 = vmatpush3.bf16.msra.mxu1 %v1426_v0 }
 0x2e3   :  { %1299 = vmatprep.subr.bf16.mxu1 %v1522_v13 }
 0x2e6   :  { %1300 = vmatpush3.bf16.msra.mxu1 %v1427_v1 }
 0x2e7   :  { %1301 = vmatprep.subr.bf16.mxu1 %v1522_v13 }
 0x2f3   :  { %v1216_v2 = vpop.f32.mrb[4].mxu1 }
 0x2f4   :  { %v1217_v5 = vpop.f32.mrb[5].mxu1 }
 0x2f5   :  { %v1218_v6 = vadd.f32 %v1217_v5, %v1216_v2  ;;  %v1219_v7 = vpop.f32.mrb[6].mxu1  ;;  %v1428_v2 = vld [vmem:[#allocation5 + $0x1b0] sm:$0xff]  }
 0x2f6   :  { %v1220_v8 = vpop.f32.mrb[7].mxu1  ;;  %1302 = vmatpush3.bf16.msra.mxu1 %v1428_v2 }
 0x2f7   :  { %v699_v9 = vadd.f32 %v1218_v6, %v567_v4  ;;  %1303 = vmatprep.subr.bf16.mxu1 %v1522_v13 }
 0x2f9   :  { %v1618_v10 = vadd.f32 %v699_v9, %v528_v49 }
 0x2fa   :  { %1304 = vmatpush3.bf16.msra.mxu1 %v1429_v3 }
 0x2fb   :  { %705 = vadd.xlane.f32.xlu1 %v1618_v10  ;;  %v708_v11 = vmul.f32 %v1618_v10, %v1618_v10  ;;  %v849_v50 = vpack.c.bf16 %v1618_v10, %v1618_v10 }
 0x2ff   :  { %709 = vadd.xlane.f32.xlu1 %v708_v11 }
 0x388   :  { %v706_v21 = vpop.xlane.xlu1 %705 }
 0x389   :  { %v707_v22 = vmul.f32 0.008333334, %v706_v21 }
 0x38b   :  { %v712_v24 = vmul.f32 %v707_v22, %v707_v22  ;;  %v714_v28 = vsub.f32 %v1618_v10, %v707_v22 }
 0x38c   :  { %v710_v23 = vpop.xlane.xlu1 %709 }
 0x38d   :  { %v711_v25 = vmul.f32 0.008333334, %v710_v23  ;;  %v979_v23 = vld [vmem:[%s1692_s3 + $0x13] ss:$0 sm:$0xff] }
 0x38f   :  { %v713_v26 = vsub.f32 %v711_v25, %v712_v24 }
 0x391   :  { %v715_v27 = vadd.f32 1e-05, %v713_v26 }
 0x393   :  { %1436 = vrsqrt.f32 %v715_v27 }
 0x39d   :  { %v1437_v29 = vpop.eup %1436 }
 0x39e   :  { %v717_v31 = vmul.f32 %v1437_v29, %v714_v28 }
 0x3a0   :  { %v719_v33 = vmul.f32 %v718_v30, %v717_v31 }
 0x3a2   :  { %v721_v34 = vadd.f32 %v720_v32, %v719_v33 }
 0x3a4   :  { %v723_v35 = vmul.f32 0.70710677, %v721_v34  ;;  %v722_v38 = vmul.f32 0.5, %v721_v34 }
 0x3a6   :  { %1438 = verf.f32 %v723_v35 }
 0x3b0   :  { %v1439_v36 = vpop.eup %1438 }
 0x3b1   :  { %v725_v40 = vadd.f32 1.0, %v1439_v36 }
 0x3b3   :  { %v726_v41 = vmul.f32 %v725_v40, %v722_v38 }
 0x3b5   :  { %v743_v37 = vpack.c.bf16 %v726_v41, %v726_v41 }
 0x3b7   :  { %1266 = vmatmul.mubr.bf16.vlgmr.msra.gmra.mrb[4].mxu0 %v743_v37 }
 0x3b8   :  { %1270 = vmatpush3.bf16.msra.mxu0 %v1414_v42  ;;  %1285 = vmatprep.mubr.msk.bf16.mxu0 %vm1523_vm0, %v1522_v13 }
 0x3b9   :  { %1271 = vmatprep.subr.bf16.mxu0 %v1522_v13 }
 0x3bc   :  { %1272 = vmatpush3.bf16.msra.mxu0 %v1415_v43 }
 0x3bd   :  { %1273 = vmatprep.subr.bf16.mxu0 %v1522_v13 }
 0x3c0   :  { %1274 = vmatpush3.bf16.msra.mxu0 %v1416_v39 }
 0x3c1   :  { %1275 = vmatprep.subr.bf16.mxu0 %v1522_v13 }
 0x3c4   :  { %1276 = vmatpush3.bf16.msra.mxu0 %v1417_v44 }
 0x3c5   :  { %1277 = vmatprep.subr.bf16.mxu0 %v1522_v13 }
 0x3c8   :  { %1278 = vmatpush3.bf16.msra.mxu0 %v1418_v45 }
 0x3c9   :  { %1279 = vmatprep.subr.bf16.mxu0 %v1522_v13 }
 0x3cc   :  { %1280 = vmatpush3.bf16.msra.mxu0 %v1419_v46 }
 0x3cd   :  { %1281 = vmatprep.subr.bf16.mxu0 %v1522_v13 }
 0x3d0   :  { %1282 = vmatpush3.bf16.msra.mxu0 %v1420_v47 }
 0x3d1   :  { %1283 = vmatprep.subr.bf16.mxu0 %v1522_v13  ;;  %v955_v13 = vld [vmem:[%s1692_s3 + $0x12] ss:$0 sm:$0xff] }
 0x3d4   :  { %1284 = vmatpush3.bf16.msra.mxu0 %v1421_v48 }
 0x3d7   :  { %1286 = vmatmul.mubr.bf16.vlgmr.msra.gmra.mrb[4].mxu0 %v849_v50 }
 0x4aa   :  { %v933_v55 = vpop.f32.mrb[4].mxu0 }
 0x4ab   :  { %v1310_v51 = vadd.f32 %v1309_v54, %v933_v55  ;;  %v1287_v56 = vpop.f32.mrb[5].mxu0 }
 0x4ac   :  { %v936_v57 = vpop.f32.mrb[6].mxu0 }
 0x4ad   :  { %940 = vadd.xlane.f32.xlu0 %v1310_v51  ;;  %v1288_v58 = vpop.f32.mrb[7].mxu0  ;;  %v943_v59 = vmul.f32 %v1310_v51, %v1310_v51 }
 0x4af   :  { %944 = vadd.xlane.f32.xlu1 %v943_v59 }
 0x53a   :  { %v941_v4 = vpop.xlane.xlu0 %940 }
 0x53b   :  { %v942_v5 = vmul.f32 0.011111111, %v941_v4 }
 0x53c   :  { %v945_v6 = vpop.xlane.xlu1 %944 }
 0x53d   :  { %v947_v7 = vmul.f32 %v942_v5, %v942_v5  ;;  %v946_v8 = vmul.f32 0.011111111, %v945_v6  ;;  %v949_v10 = vsub.f32 %v1310_v51, %v942_v5 }
 0x53f   :  { %v948_v49 = vsub.f32 %v946_v8, %v947_v7 }
 0x541   :  { %v950_v9 = vadd.f32 1e-05, %v948_v49 }
 0x543   :  { %1440 = vrsqrt.f32 %v950_v9 }
 0x54d   :  { %v1441_v11 = vpop.eup %1440 }
 0x54e   :  { %v952_v14 = vmul.f32 %v1441_v11, %v949_v10 }
 0x550   :  { %v954_v15 = vmul.f32 %v953_v12, %v952_v14 }
 0x552   :  { %v956_v16 = vadd.f32 %v955_v13, %v954_v15 }
 0x554   :  { %v958_v17 = vmul.f32 0.70710677, %v956_v16  ;;  %v957_v19 = vmul.f32 0.5, %v956_v16 }
 0x556   :  { %1442 = verf.f32 %v958_v17 }
 0x560   :  { %v1443_v18 = vpop.eup %1442 }
 0x561   :  { %v960_v20 = vadd.f32 1.0, %v1443_v18 }
 0x563   :  { %v961_v21 = vmul.f32 %v960_v20, %v957_v19 }
 0x565   :  { %v978_v22 = vpack.c.bf16 %v961_v21, %v961_v21 }
 0x567   :  { %1306 = vmatmul.mubr.bf16.vlgmr.msra.gmra.mrb[8].mxu1 %v978_v22 }
 0x63a   :  { %v1062_v24 = vpop.f32.mrb[8].mxu1 }
 0x63b   :  { %v1063_v25 = vadd.f32 %v1062_v24, %v979_v23  ;;  %v1307_v26 = vpop.f32.mrb[9].mxu1 }
 0x63c   :  { %v1065_v27 = vpop.f32.mrb[10].mxu1 }
 0x63d   :  { %v1068_v28 = vadd.f32 %v1310_v51, %v1063_v25  ;;  %v1308_v29 = vpop.f32.mrb[11].mxu1 }
 0x63f   :  { %1069 = vst [vmem:[#allocation7] sm:$0xff] %v1068_v28 }
 0x640   :  { %1499 = shalt.err (!%p1496_p6)
}
 0x641   :  { %s1500_s3 = scalar_lea.hbm %s1693_s4, 128 }
 0x642   :  { %p1501_p7 = scmp.ne.s32.totalorder %s1693_s4, %s1500_s3  ;;  %p1504_p8 = scmp.lt.u32.totalorder %s1500_s3, %s1693_s4 }
 0x644   :  { %p1506_p9 = pnand %p1504_p8, %p1501_p7 }
 0x646   :  { %1509 = shalt.err (!%p1506_p9)
}
 0x647   :  { %1079 = dma.vmem_to_hbm [thread:$0]  %s1077_s14, 128, %s1693_s4, [#allocation4]  }
 0x648   :  { %1514 = dma.done.wait [#allocation4], 128  }
 0x649   :  { %1515 = vsyncadd [#allocation4], 4294967168 }
 0x64a   :  { %1083 = vsyncpa [#allocation3], 1 }
 0x64b   :  { %1084 = vsyncpa [#allocation6], 1 }
 0x64c   :  { %1085 = vsyncpa [#allocation4], 1 }

</bundles_post_ra>
